<compile_context>
chip_gen: v6e
topology: v6e:2x2x1
jax: 0.10.0
libtpu: 0.0.40
codegen_flags: <defaults>
</compile_context>

<pallas_src>
import numpy as np
import jax
import jax.numpy as jnp
from jax.experimental import pallas as pl
from jax.experimental.pallas import tpu as pltpu


# ----------------------------- parameter setup (host-side NumPy glue) -----------------------------

def _round_up(x, m):
    return ((x + m - 1) // m) * m


def _hann_window(n):
    # torch.hann_window(n, periodic=True), float64 for setup accuracy
    i = np.arange(n, dtype=np.float64)
    return 0.5 - 0.5 * np.cos(2.0 * np.pi * i / n)


def _hz_to_mel_htk(f):
    return 2595.0 * np.log10(1.0 + np.asarray(f, dtype=np.float64) / 700.0)


def _mel_to_hz_htk(m):
    return 700.0 * (10.0 ** (np.asarray(m, dtype=np.float64) / 2595.0) - 1.0)


def _melscale_fbanks(n_freqs, f_min, f_max, n_mels, sr):
    # torchaudio.functional.melscale_fbanks(norm=None, mel_scale="htk")
    all_freqs = np.linspace(0.0, sr / 2.0, n_freqs)
    m_pts = np.linspace(_hz_to_mel_htk(f_min), _hz_to_mel_htk(f_max), n_mels + 2)
    f_pts = _mel_to_hz_htk(m_pts)
    f_diff = f_pts[1:] - f_pts[:-1]                      # (n_mels + 1,)
    slopes = f_pts[None, :] - all_freqs[:, None]         # (n_freqs, n_mels + 2)
    down = (-slopes[:, :-2]) / f_diff[:-1]
    up = slopes[:, 2:] / f_diff[1:]
    fb = np.maximum(0.0, np.minimum(down, up))
    return fb.astype(np.float32)                         # (n_freqs, n_mels)


def _dft_matrices(nfft):
    # Real one-sided DFT as two dense matrices (nfft, nfft//2 + 1), float64
    n_freqs = nfft // 2 + 1
    n = np.arange(nfft, dtype=np.float64)[:, None]
    k = np.arange(n_freqs, dtype=np.float64)[None, :]
    ang = 2.0 * np.pi * n * k / nfft
    return np.cos(ang), -np.sin(ang)


# ----------------------------------- Pallas kernel ---------------------------------

def _mel_kernel(frames_ref, w_ref, fb_ref, out_ref):
    # frames_ref: (RT, nfft)        bf16   windowless frames (window folded into w)
    # w_ref:      (nfft, 2*NFp)     bf16   [win*cos | win*(-sin)], lane-padded
    # fb_ref:     (NFp, NMp)        bf16   mel filterbank, zero-padded rows/cols
    # out_ref:    (RT, NMp)         f32    log1p(mel power), lane-dense store
    nfp = fb_ref.shape[0]
    # One MXU pass produces real and imaginary parts side by side (f32 accumulation).
    reim = jnp.dot(frames_ref[...], w_ref[...], preferred_element_type=jnp.float32)
    re = reim[:, :nfp]
    im = reim[:, nfp:]
    power = re * re + im * im                       # |STFT|^2 / sum(w^2); padded cols are 0
    mel = jnp.dot(power.astype(jnp.bfloat16), fb_ref[...],
                  preferred_element_type=jnp.float32)
    out_ref[...] = jnp.log1p(mel)


def _mel_pallas(frames, w_fused, fb_pad):
    # frames: (R, nfft) bf16 ; w_fused: (nfft, 2*NFp) bf16 ; fb_pad: (NFp, NMp) bf16
    R, nfft = frames.shape
    two_nfp = w_fused.shape[1]
    nfp, nmp = fb_pad.shape

    # Row tiling: 256 rows per step when there is enough work, otherwise one tile
    # rounded up to a multiple of 16 (bf16 sublane packing).
    if R >= 256:
        row_tile = 256
    else:
        row_tile = max(16, _round_up(R, 16))
    r_pad = _round_up(R, row_tile)
    if r_pad != R:
        frames = jnp.pad(frames, ((0, r_pad - R), (0, 0)))

    out = pl.pallas_call(
        _mel_kernel,
        out_shape=jax.ShapeDtypeStruct((r_pad, nmp), jnp.float32),
        grid_spec=pltpu.PrefetchScalarGridSpec(
            num_scalar_prefetch=0,
            grid=(r_pad // row_tile,),
            in_specs=[
                pl.BlockSpec((row_tile, nfft), lambda i: (i, 0)),
                pl.BlockSpec((nfft, two_nfp), lambda i: (0, 0)),   # constant across grid
                pl.BlockSpec((nfp, nmp), lambda i: (0, 0)),        # constant across grid
            ],
            out_specs=pl.BlockSpec((row_tile, nmp), lambda i: (i, 0)),
        ),
        compiler_params=pltpu.CompilerParams(dimension_semantics=("parallel",)),
    )(frames, w_fused, fb_pad)
    return out  # (r_pad, NMp); caller slices valid rows / mel columns


# ------------------------------------- module --------------------------------------

class StreamableMelSpectrogramPallas:
    """Functional equivalent of StreamableMelSpectrogram.forward.

    __call__(x, audio_buffer) -> (spec, new_audio_buffer)
      x:            (B, 1, T) float32
      audio_buffer: (B, 1, nfft - hop_size) float32
      spec:         (B, n_mels, n_frames) float32  (log1p of mel power spectrogram)
    """

    def __init__(self, sr=16000, n_mels=32, nfft=256, hop_size=64,
                 stream=True, skip_features=None):
        self.sr = sr
        self.n_mels = n_mels
        self.nfft = nfft
        self.hop_size = hop_size
        self.stream = stream
        self.skip_features = skip_features

        n_freqs = nfft // 2 + 1
        self.n_freqs = n_freqs

        win = _hann_window(nfft)                            # f64 periodic Hann
        self.raw_window = win.astype(np.float32)
        # normalized=True in torchaudio Spectrogram: complex spec /= sqrt(sum(w^2)),
        # i.e. power /= sum(w^2).  Fold 1/sqrt(sum(w^2)) into the window, then fold
        # the window into the DFT matrices (removes the in-kernel VPU multiply).
        win_norm = win / np.sqrt(np.sum(win ** 2))

        cosm, nsinm = _dft_matrices(nfft)                   # (nfft, n_freqs) f64
        cosw = win_norm[:, None] * cosm
        sinw = win_norm[:, None] * nsinm

        nfp = _round_up(n_freqs, 128)                       # lane-pad freq axis
        nmp = _round_up(n_mels, 128)                        # lane-pad mel axis
        self._nfp = nfp
        self._nmp = nmp

        w = np.zeros((nfft, 2 * nfp), np.float32)           # fused [cos | sin] weight
        w[:, :n_freqs] = cosw
        w[:, nfp:nfp + n_freqs] = sinw

        fb = _melscale_fbanks(n_freqs, 0.0, sr / 2.0, n_mels, sr)
        self.fb = fb                                        # f32, unpadded (for reference)
        fbp = np.zeros((nfp, nmp), np.float32)
        fbp[:n_freqs, :n_mels] = fb

        # bf16 operands -> single-pass MXU matmuls with f32 accumulation.
        self.w_fused = jnp.asarray(w, dtype=jnp.bfloat16)
        self.fb_pad = jnp.asarray(fbp, dtype=jnp.bfloat16)

    def init_buffer(self, batch_size):
        return jnp.zeros((batch_size, 1, self.nfft - self.hop_size), jnp.float32)

    def _frame(self, x_flat):
        # x_flat: (B, L) -> (B, F, nfft), center=False framing
        B, L = x_flat.shape
        F = 1 + (L - self.nfft) // self.hop_size
        if self.nfft % self.hop_size == 0:
            # hop divides nfft: build frames from nfft//hop shifted contiguous slices
            # (cheap slices + reshape instead of a 2-D gather).
            n_chunks = self.nfft // self.hop_size
            chunks = [
                jax.lax.slice_in_dim(
                    x_flat, j * self.hop_size,
                    j * self.hop_size + F * self.hop_size, axis=1
                ).reshape(B, F, self.hop_size)
                for j in range(n_chunks)
            ]
            return jnp.concatenate(chunks, axis=-1)
        idx = (np.arange(F)[:, None] * self.hop_size + np.arange(self.nfft)[None, :])
        return x_flat[:, idx]

    def __call__(self, x, audio_buffer):
        x = x.astype(jnp.float32)
        if self.stream:
            x = jnp.concatenate([audio_buffer, x], axis=-1)              # (B, 1, L)
        new_buffer = x[..., -(self.nfft - self.hop_size):] if self.stream else audio_buffer

        # TODO(synk): build frame tiles fully in-kernel from the contiguous audio
        # (memory_space=pl.ANY + pl.ds(row*hop, nfft) loads) to avoid materializing the
        # 4x-overlapped frames array; kept in XLA because collapsed (B*F) row tiles can
        # straddle batch boundaries.
        frames = self._frame(x[:, 0, :].astype(jnp.bfloat16))            # (B, F, nfft) bf16
        B, F, _ = frames.shape

        mel_pad = _mel_pallas(frames.reshape(B * F, self.nfft),
                              self.w_fused, self.fb_pad)                 # (R_pad, NMp)
        spec = mel_pad[:B * F, :self.n_mels].reshape(B, F, self.n_mels)
        spec = jnp.transpose(spec, (0, 2, 1))                            # (B, n_mels, F)

        if self.skip_features is not None:
            spec = spec[:, :self.skip_features]
        if not self.stream:
            spec = spec[..., :-1]
        return spec, new_buffer


# ---------------------------------- reference (jnp, f32) ---------------------------------

def _reference(module, x, audio_buffer):
    x = jnp.concatenate([audio_buffer.astype(jnp.float32), x.astype(jnp.float32)], axis=-1)
    L = x.shape[-1]
    F = 1 + (L - module.nfft) // module.hop_size
    idx = (np.arange(F)[:, None] * module.hop_size + np.arange(module.nfft)[None, :])
    frames = x[:, 0, :][:, idx]
    win = jnp.asarray(module.raw_window)
    fw = frames * win[None, None, :]
    fft = jnp.fft.rfft(fw, n=module.nfft, axis=-1)
    power = (jnp.abs(fft) ** 2) / jnp.sum(win ** 2)
    mel = jnp.einsum("bfk,km->bfm", power, jnp.asarray(module.fb))
    return jnp.transpose(jnp.log1p(mel), (0, 2, 1))


# --------------------------------------- main ---------------------------------------

if __name__ == "__main__":
    B = 2
    T = 512
    mod = StreamableMelSpectrogramPallas(sr=16000, n_mels=32, nfft=256, hop_size=64,
                                         stream=True, skip_features=None)

    key = jax.random.PRNGKey(0)
    x = jax.random.normal(key, (B, 1, T), dtype=jnp.float32)
    buf = mod.init_buffer(B)

    spec, new_buf = mod(x, buf)
    spec = jax.block_until_ready(spec)
    new_buf = jax.block_until_ready(new_buf)

    n_frames = 1 + (T + mod.nfft - mod.hop_size - mod.nfft) // mod.hop_size
    assert spec.shape == (B, mod.n_mels, n_frames), spec.shape
    assert new_buf.shape == (B, 1, mod.nfft - mod.hop_size), new_buf.shape

    # sanity vs. pure-JAX f32 rfft reference (tolerance covers bf16 MXU operands)
    ref = jax.block_until_ready(_reference(mod, x, buf))
    np.testing.assert_allclose(np.asarray(spec), np.asarray(ref), rtol=5e-2, atol=5e-2)

    print("KERNEL_OK")
</pallas_src>

<mosaic_0001>
module attributes {stable_mosaic.version = 11 : i64} {
  func.func @_mel_kernel(%arg0: i32, %arg1: memref<16x256xbf16, #tpu.memory_space<vmem>>, %arg2: memref<256x512xbf16, #tpu.memory_space<vmem>>, %arg3: memref<256x128xbf16, #tpu.memory_space<vmem>>, %arg4: memref<16x128xf32, #tpu.memory_space<vmem>>) attributes {dimension_semantics = [#tpu.dimension_semantics<parallel>], iteration_bounds = array<i64: 1>, scalar_prefetch = 0 : i64, scratch_operands = 0 : i64, tpu.core_type = #tpu.core_type<tc>, window_params = [{transform_indices = @transform_0, window_bounds = array<i64: 16, 256>}, {pipeline_mode = #tpu.pipeline_mode<synchronous>, transform_indices = @transform_1, window_bounds = array<i64: 256, 512>}, {pipeline_mode = #tpu.pipeline_mode<synchronous>, transform_indices = @transform_2, window_bounds = array<i64: 256, 128>}, {transform_indices = @transform_3, window_bounds = array<i64: 16, 128>}]} {
    %c0 = arith.constant 0 : index
    %c0_0 = arith.constant 0 : index
    %0 = vector.load %arg1[%c0, %c0_0] : memref<16x256xbf16, #tpu.memory_space<vmem>>, vector<16x256xbf16>
    %c0_1 = arith.constant 0 : index
    %c0_2 = arith.constant 0 : index
    %1 = vector.load %arg2[%c0_1, %c0_2] : memref<256x512xbf16, #tpu.memory_space<vmem>>, vector<256x512xbf16>
    %cst = arith.constant dense<0.000000e+00> : vector<16x512xf32>
    %2 = tpu.matmul %0, %1, %cst {dimension_numbers = #tpu.dot_dimension_numbers<[1], [0], [0], [1], [0, 0, 1, 1], [], []>} : vector<16x256xbf16>, vector<256x512xbf16>, vector<16x512xf32> -> vector<16x512xf32>
    %3 = vector.extract_strided_slice %2 {offsets = [0, 0], sizes = [16, 256], strides = [1, 1]} : vector<16x512xf32> to vector<16x256xf32>
    %4 = vector.extract_strided_slice %2 {offsets = [0, 256], sizes = [16, 256], strides = [1, 1]} : vector<16x512xf32> to vector<16x256xf32>
    %5 = arith.mulf %3, %3 : vector<16x256xf32>
    %6 = arith.mulf %4, %4 : vector<16x256xf32>
    %7 = arith.addf %5, %6 : vector<16x256xf32>
    %8 = arith.truncf %7 : vector<16x256xf32> to vector<16x256xbf16>
    %c0_3 = arith.constant 0 : index
    %c0_4 = arith.constant 0 : index
    %9 = vector.load %arg3[%c0_3, %c0_4] : memref<256x128xbf16, #tpu.memory_space<vmem>>, vector<256x128xbf16>
    %cst_5 = arith.constant dense<0.000000e+00> : vector<16x128xf32>
    %10 = tpu.matmul %8, %9, %cst_5 {dimension_numbers = #tpu.dot_dimension_numbers<[1], [0], [0], [1], [0, 0, 1, 1], [], []>} : vector<16x256xbf16>, vector<256x128xbf16>, vector<16x128xf32> -> vector<16x128xf32>
    %11 = math.log1p %10 : vector<16x128xf32>
    %c0_6 = arith.constant 0 : index
    %c0_7 = arith.constant 0 : index
    %12 = vector.load %arg4[%c0_6, %c0_7] : memref<16x128xf32, #tpu.memory_space<vmem>>, vector<16x128xf32>
    tpu.vector_store %arg4[%c0_6, %c0_7], %11 {strides = array<i32>} : memref<16x128xf32, #tpu.memory_space<vmem>>, vector<16x128xf32>,
    return
  }
  func.func @transform_0(%arg0: i32) -> (i32, i32) {
    %c0_i32 = arith.constant 0 : i32
    %c0_i32_0 = arith.constant 0 : i32
    return %arg0, %c0_i32 : i32, i32
  }
  func.func @transform_1(%arg0: i32) -> (i32, i32) {
    %c0_i32 = arith.constant 0 : i32
    %c0_i32_0 = arith.constant 0 : i32
    %c0_i32_1 = arith.constant 0 : i32
    return %c0_i32, %c0_i32_0 : i32, i32
  }
  func.func @transform_2(%arg0: i32) -> (i32, i32) {
    %c0_i32 = arith.constant 0 : i32
    %c0_i32_0 = arith.constant 0 : i32
    %c0_i32_1 = arith.constant 0 : i32
    return %c0_i32, %c0_i32_0 : i32, i32
  }
  func.func @transform_3(%arg0: i32) -> (i32, i32) {
    %c0_i32 = arith.constant 0 : i32
    %c0_i32_0 = arith.constant 0 : i32
    return %arg0, %c0_i32 : i32, i32
  }
}

</mosaic_0001>

<bundles_post_ra>
// kernel: tpu_custom_call.1
= control target key start
LH: loop header
LB: loop body
LE: loop exit
PB: predicated region body
PF: predicated region fallthrough
CT: control target
= control target key end

     0   :  { %8 = vsyncpa [#allocation3], 0  ;;  %s1127_s0 = inlined_call_operand.hbm [shape: bf16[16,256], index: 0, kind: input, shape index: {}]   ;;  %s1128_s1 = inlined_call_operand.hbm [shape: bf16[256,512], index: 1, kind: input, shape index: {}]   ;;  %s1129_s2 = inlined_call_operand.hbm [shape: bf16[256,128], index: 2, kind: input, shape index: {}]   ;;  %s1130_s3 = inlined_call_operand.hbm [shape: f32[16,128], index: 3, kind: output, shape index: {}]  }
   0x1   :  { %9 = vsyncpa [#allocation6], 0 }
   0x2   :  { %10 = vsyncpa [#allocation4], 0  ;;  %s1079_s12 = smov [#allocation5]  }
   0x3   :  { %s28_s13 = sshll.u32 %s1079_s12, 4  ;;  %s29_s13 = int_to_ptr.vmem [resolvable:$true] %s28_s13 }
   0x4   :  { %s1001_s14 = scalar_lea.vmem %s29_s13, 8192  ;;  %p1006_p1 = scmp.lt.s32.totalorder %s29_s13, %s29_s13 }
   0x5   :  { %p1002_p0 = scmp.ne.s32.totalorder %s29_s13, %s1001_s14  ;;  %p1007_p2 = scmp.lt.s32.totalorder %s1001_s14, %s1001_s14 }
   0x7   :  { %p1008_p3 = por %p1007_p2, %p1006_p1 }
   0x9   :  { %p1009_p4 = pnand %p1008_p3, %p1002_p0 }
   0xb   :  { %1012 = shalt.err (!%p1009_p4)
}
   0xc   :  { %s1080_s15 = smov 256   ;;  %s1081_s16 = smov 16  }
   0xd   :  { %34 = dma.hbm_to_vmem [thread:$0]  %s1128_s1, 8192, %s29_s13, [#allocation6], %s1080_s15, %s1080_s15, %s1081_s16  }
   0xe   :  { %s1082_s19 = smov [#allocation2]  }
   0xf   :  { %s16_s20 = sshll.u32 %s1082_s19, 4  ;;  %s17_s20 = int_to_ptr.vmem [resolvable:$true] %s16_s20 }
  0x10   :  { %s1021_s21 = scalar_lea.vmem %s17_s20, 256  ;;  %p1026_p6 = scmp.lt.s32.totalorder %s17_s20, %s17_s20 }
  0x11   :  { %p1022_p5 = scmp.ne.s32.totalorder %s17_s20, %s1021_s21  ;;  %p1027_p7 = scmp.lt.s32.totalorder %s1021_s21, %s1021_s21 }
  0x13   :  { %p1028_p8 = por %p1027_p7, %p1026_p6 }
  0x15   :  { %p1029_p9 = pnand %p1028_p8, %p1022_p5 }
  0x17   :  { %1032 = shalt.err (!%p1029_p9)
}
  0x18   :  { %s1083_s22 = smov 128   ;;  %s1084_s23 = smov 8  }
  0x19   :  { %22 = dma.hbm_to_vmem [thread:$0]  %s1127_s0, 256, %s17_s20, [#allocation3], %s1083_s22, %s1083_s22, %s1084_s23  }
  0x1a   :  { %s1085_s1 = smov [#allocation7]  }
  0x1b   :  { %s40_s26 = sshll.u32 %s1085_s1, 4  ;;  %s41_s26 = int_to_ptr.vmem [resolvable:$true] %s40_s26 }
  0x1c   :  { %s1041_s27 = scalar_lea.vmem %s41_s26, 2048  ;;  %p1046_p11 = scmp.lt.s32.totalorder %s41_s26, %s41_s26 }
  0x1d   :  { %p1042_p10 = scmp.ne.s32.totalorder %s41_s26, %s1041_s27  ;;  %p1047_p12 = scmp.lt.s32.totalorder %s1041_s27, %s1041_s27 }
  0x1f   :  { %p1048_p13 = por %p1047_p12, %p1046_p11 }
  0x21   :  { %p1049_p0 = pnand %p1048_p13, %p1042_p10 }
  0x23   :  { %1052 = shalt.err (!%p1049_p0)
}
  0x24   :  { %s1086_s28 = smov 64   ;;  %s1087_s29 = smov 4  }
  0x25   :  { %46 = dma.hbm_to_vmem [thread:$0]  %s1129_s2, 2048, %s41_s26, [#allocation6], %s1086_s28, %s1086_s28, %s1087_s29  }
  0x26   :  { %1073 = dma.done.wait [#allocation3], 256  }
  0x27   :  { %1074 = vsyncadd [#allocation3], 4294967040 }
  0x28   :  { %1075 = dma.done.wait [#allocation6], 10240  }
  0x29   :  { %1076 = vsyncadd [#allocation6], 4294957056  ;;  %v874_v0 = vld [vmem:[#allocation5 + $0xe4] ss:$16 sps:$4 sm:$0xff]   ;;  %v876_v1 = vld [vmem:[#allocation5 + $0xec] ss:$16 sps:$4 sm:$0xff]  }
  0x2a   :  { %453 = vmatprep.subr.bf16.mxu0 %v874_v0  ;;  %v878_v2 = vld [vmem:[#allocation5 + $0xe0] ss:$16 sps:$4 sm:$0xff]   ;;  %v879_v3 = vld [vmem:[#allocation5 + $0xe8] ss:$16 sps:$4 sm:$0xff]   ;;  %496 = vmatprep.subr.bf16.mxu1 %v876_v1  ;;  %v880_v4 = vld [vmem:[#allocation5 + $0xc4] ss:$16 sps:$4 sm:$0xff]  }
  0x2b   :  { %454 = vmatpush1.bf16.msra.mxu0 %v878_v2  ;;  %497 = vmatpush1.bf16.msra.mxu1 %v879_v3  ;;  %v882_v5 = vld [vmem:[#allocation5 + $0xcc] ss:$16 sps:$4 sm:$0xff]   ;;  %v884_v6 = vld [vmem:[#allocation5 + $0xc0] ss:$16 sps:$4 sm:$0xff]   ;;  %v885_v7 = vld [vmem:[#allocation5 + $0xc8] ss:$16 sps:$4 sm:$0xff]  }
  0x2c   :  { %455 = vmatprep.subr.bf16.mxu0 %v880_v4  ;;  %498 = vmatprep.subr.bf16.mxu1 %v882_v5  ;;  %v886_v8 = vld [vmem:[#allocation5 + $0xa4] ss:$16 sps:$4 sm:$0xff]   ;;  %v888_v9 = vld [vmem:[#allocation5 + $0xac] ss:$16 sps:$4 sm:$0xff]   ;;  %v890_v10 = vld [vmem:[#allocation5 + $0xa0] ss:$16 sps:$4 sm:$0xff]  }
  0x2d   :  { %v891_v11 = vld [vmem:[#allocation5 + $0xa8] ss:$16 sps:$4 sm:$0xff]   ;;  %v892_v12 = vld [vmem:[#allocation5 + $0x84] ss:$16 sps:$4 sm:$0xff]   ;;  %v894_v13 = vld [vmem:[#allocation5 + $0x8c] ss:$16 sps:$4 sm:$0xff]  }
  0x2e   :  { %v896_v14 = vld [vmem:[#allocation5 + $0x80] ss:$16 sps:$4 sm:$0xff]   ;;  %v897_v15 = vld [vmem:[#allocation5 + $0x88] ss:$16 sps:$4 sm:$0xff]   ;;  %v898_v16 = vld [vmem:[#allocation5 + $0x64] ss:$16 sps:$4 sm:$0xff]  }
  0x2f   :  { %456 = vmatpush1.bf16.msra.mxu0 %v884_v6  ;;  %499 = vmatpush1.bf16.msra.mxu1 %v885_v7  ;;  %v900_v17 = vld [vmem:[#allocation5 + $0x6c] ss:$16 sps:$4 sm:$0xff]   ;;  %v902_v18 = vld [vmem:[#allocation5 + $0x60] ss:$16 sps:$4 sm:$0xff]   ;;  %v903_v19 = vld [vmem:[#allocation5 + $0x68] ss:$16 sps:$4 sm:$0xff]  }
  0x30   :  { %457 = vmatprep.subr.bf16.mxu0 %v886_v8  ;;  %500 = vmatprep.subr.bf16.mxu1 %v888_v9  ;;  %v904_v20 = vld [vmem:[#allocation5 + $0x44] ss:$16 sps:$4 sm:$0xff]   ;;  %v906_v21 = vld [vmem:[#allocation5 + $0x4c] ss:$16 sps:$4 sm:$0xff]   ;;  %v908_v22 = vld [vmem:[#allocation5 + $0x40] ss:$16 sps:$4 sm:$0xff]  }
  0x31   :  { %v909_v23 = vld [vmem:[#allocation5 + $0x48] ss:$16 sps:$4 sm:$0xff]   ;;  %v910_v24 = vld [vmem:[#allocation5 + $0x24] ss:$16 sps:$4 sm:$0xff]   ;;  %v912_v25 = vld [vmem:[#allocation5 + $0x2c] ss:$16 sps:$4 sm:$0xff]  }
  0x32   :  { %v914_v26 = vld [vmem:[#allocation5 + $0x20] ss:$16 sps:$4 sm:$0xff]   ;;  %v915_v27 = vld [vmem:[#allocation5 + $0x28] ss:$16 sps:$4 sm:$0xff]   ;;  %v916_v28 = vld [vmem:[#allocation5 + $0x4] ss:$16 sps:$4 sm:$0xff]  }
  0x33   :  { %458 = vmatpush1.bf16.msra.mxu0 %v890_v10  ;;  %501 = vmatpush1.bf16.msra.mxu1 %v891_v11  ;;  %v918_v29 = vld [vmem:[#allocation5 + $0xc] ss:$16 sps:$4 sm:$0xff]   ;;  %v920_v30 = vld [vmem:[#allocation5] ss:$16 sps:$4 sm:$0xff]   ;;  %v921_v31 = vld [vmem:[#allocation5 + $0x8] ss:$16 sps:$4 sm:$0xff]  }
  0x34   :  { %459 = vmatprep.subr.bf16.mxu0 %v892_v12  ;;  %502 = vmatprep.subr.bf16.mxu1 %v894_v13  ;;  %v922_v32 = vld [vmem:[#allocation5 + $0x1e4] ss:$16 sps:$4 sm:$0xff]   ;;  %v924_v33 = vld [vmem:[#allocation5 + $0x1ec] ss:$16 sps:$4 sm:$0xff]   ;;  %v926_v34 = vld [vmem:[#allocation5 + $0x1e0] ss:$16 sps:$4 sm:$0xff]  }
  0x35   :  { %v927_v35 = vld [vmem:[#allocation5 + $0x1e8] ss:$16 sps:$4 sm:$0xff]   ;;  %v928_v36 = vld [vmem:[#allocation5 + $0x1c4] ss:$16 sps:$4 sm:$0xff]   ;;  %v930_v37 = vld [vmem:[#allocation5 + $0x1cc] ss:$16 sps:$4 sm:$0xff]  }
  0x36   :  { %v932_v38 = vld [vmem:[#allocation5 + $0x1c0] ss:$16 sps:$4 sm:$0xff]   ;;  %v933_v39 = vld [vmem:[#allocation5 + $0x1c8] ss:$16 sps:$4 sm:$0xff]   ;;  %v934_v40 = vld [vmem:[#allocation5 + $0x1a4] ss:$16 sps:$4 sm:$0xff]  }
  0x37   :  { %460 = vmatpush1.bf16.msra.mxu0 %v896_v14  ;;  %503 = vmatpush1.bf16.msra.mxu1 %v897_v15  ;;  %v936_v41 = vld [vmem:[#allocation5 + $0x1ac] ss:$16 sps:$4 sm:$0xff]   ;;  %v938_v42 = vld [vmem:[#allocation5 + $0x1a0] ss:$16 sps:$4 sm:$0xff]   ;;  %v939_v43 = vld [vmem:[#allocation5 + $0x1a8] ss:$16 sps:$4 sm:$0xff]  }
  0x38   :  { %461 = vmatprep.subr.bf16.mxu0 %v898_v16  ;;  %504 = vmatprep.subr.bf16.mxu1 %v900_v17  ;;  %v940_v44 = vld [vmem:[#allocation5 + $0x184] ss:$16 sps:$4 sm:$0xff]   ;;  %v942_v45 = vld [vmem:[#allocation5 + $0x18c] ss:$16 sps:$4 sm:$0xff]   ;;  %v944_v46 = vld [vmem:[#allocation5 + $0x180] ss:$16 sps:$4 sm:$0xff]  }
  0x39   :  { %v945_v47 = vld [vmem:[#allocation5 + $0x188] ss:$16 sps:$4 sm:$0xff]   ;;  %v972_v48 = vld [vmem:[#allocation2 + $0x4] ss:$8 sps:$4 sm:$0xff]   ;;  %v950_v51 = vld [vmem:[#allocation5 + $0x160] ss:$16 sps:$4 sm:$0xff]  }
  0x3a   :  { %v946_v49 = vld [vmem:[#allocation5 + $0x164] ss:$16 sps:$4 sm:$0xff]   ;;  %v948_v50 = vld [vmem:[#allocation5 + $0x16c] ss:$16 sps:$4 sm:$0xff]   ;;  %485 = vmatprep.mubr.bf16.mxu0 %v972_v48  ;;  %528 = vmatprep.mubr.bf16.mxu1 %v972_v48  ;;  %v951_v52 = vld [vmem:[#allocation5 + $0x168] ss:$16 sps:$4 sm:$0xff]  }
  0x3b   :  { %462 = vmatpush1.bf16.msra.mxu0 %v902_v18  ;;  %505 = vmatpush1.bf16.msra.mxu1 %v903_v19  ;;  %v952_v53 = vld [vmem:[#allocation5 + $0x144] ss:$16 sps:$4 sm:$0xff]   ;;  %v954_v54 = vld [vmem:[#allocation5 + $0x14c] ss:$16 sps:$4 sm:$0xff]   ;;  %v956_v55 = vld [vmem:[#allocation5 + $0x140] ss:$16 sps:$4 sm:$0xff]  }
  0x3c   :  { %463 = vmatprep.subr.bf16.mxu0 %v904_v20  ;;  %506 = vmatprep.subr.bf16.mxu1 %v906_v21  ;;  %v957_v56 = vld [vmem:[#allocation5 + $0x148] ss:$16 sps:$4 sm:$0xff]   ;;  %v958_v57 = vld [vmem:[#allocation5 + $0x124] ss:$16 sps:$4 sm:$0xff]   ;;  %v960_v58 = vld [vmem:[#allocation5 + $0x12c] ss:$16 sps:$4 sm:$0xff]  }
  0x3d   :  { %v962_v59 = vld [vmem:[#allocation5 + $0x120] ss:$16 sps:$4 sm:$0xff]   ;;  %v963_v60 = vld [vmem:[#allocation5 + $0x128] ss:$16 sps:$4 sm:$0xff]   ;;  %v964_v61 = vld [vmem:[#allocation5 + $0x104] ss:$16 sps:$4 sm:$0xff]  }
  0x3e   :  { %v966_v62 = vld [vmem:[#allocation5 + $0x10c] ss:$16 sps:$4 sm:$0xff]   ;;  %v968_v63 = vld [vmem:[#allocation5 + $0x100] ss:$16 sps:$4 sm:$0xff]   ;;  %v969_v0 = vld [vmem:[#allocation5 + $0x108] ss:$16 sps:$4 sm:$0xff]  }
  0x3f   :  { %464 = vmatpush1.bf16.msra.mxu0 %v908_v22  ;;  %507 = vmatpush1.bf16.msra.mxu1 %v909_v23  ;;  %v973_v1 = vld [vmem:[#allocation7 + $0x78] sm:$0xff]   ;;  %v975_v4 = vld [vmem:[#allocation7 + $0x70] sm:$0xff]   ;;  %v977_v6 = vld [vmem:[#allocation7 + $0x68] sm:$0xff]   ;;  %s1088_s0 = smov [#allocation8]  }
  0x40   :  { %465 = vmatprep.subr.bf16.mxu0 %v910_v24  ;;  %508 = vmatprep.subr.bf16.mxu1 %v912_v25  ;;  %v970_v2 = vld [vmem:[#allocation2] ss:$8 sps:$4 sm:$0xff]   ;;  %v978_v7 = vld [vmem:[#allocation7 + $0x28] sm:$0xff]   ;;  %v979_v8 = vld [vmem:[#allocation7 + $0x60] sm:$0xff]   ;;  %s747_s2 = sshll.u32 %s1088_s0, 4  ;;  %s748_s2 = int_to_ptr.vmem [resolvable:$true] %s747_s2 }
  0x41   :  { %v974_v3 = vld [vmem:[#allocation7 + $0x38] sm:$0xff]   ;;  %v976_v5 = vld [vmem:[#allocation7 + $0x30] sm:$0xff]   ;;  %v980_v9 = vld [vmem:[#allocation7 + $0x20] sm:$0xff]   ;;  %s1053_s5 = scalar_lea.vmem %s748_s2, 256  ;;  %p1058_p2 = scmp.lt.s32.totalorder %s748_s2, %s748_s2 }
  0x42   :  { %v981_v10 = vld [vmem:[#allocation7 + $0x58] sm:$0xff]   ;;  %v983_v12 = vld [vmem:[#allocation7 + $0x50] sm:$0xff]   ;;  %v985_v14 = vld [vmem:[#allocation7 + $0x48] sm:$0xff]   ;;  %p1054_p1 = scmp.ne.s32.totalorder %s748_s2, %s1053_s5  ;;  %p1059_p3 = scmp.lt.s32.totalorder %s1053_s5, %s1053_s5 }
  0x43   :  { %466 = vmatpush1.bf16.msra.mxu0 %v914_v26  ;;  %509 = vmatpush1.bf16.msra.mxu1 %v915_v27  ;;  %v982_v11 = vld [vmem:[#allocation7 + $0x18] sm:$0xff]   ;;  %v984_v13 = vld [vmem:[#allocation7 + $0x10] sm:$0xff]   ;;  %v986_v15 = vld [vmem:[#allocation7 + $0x8] sm:$0xff]  }
  0x44   :  { %467 = vmatprep.subr.bf16.mxu0 %v916_v28  ;;  %510 = vmatprep.subr.bf16.mxu1 %v918_v29  ;;  %v987_v16 = vld [vmem:[#allocation7 + $0x40] sm:$0xff]   ;;  %p1060_p4 = por %p1059_p3, %p1058_p2 }
  0x45   :  { %v988_v17 = vld [vmem:[#allocation7] sm:$0xff]  }
  0x46   :  { %p1061_p5 = pnand %p1060_p4, %p1054_p1 }
  0x47   :  { %468 = vmatpush1.bf16.msra.mxu0 %v920_v30  ;;  %511 = vmatpush1.bf16.msra.mxu1 %v921_v31 }
  0x48   :  { %469 = vmatprep.subr.bf16.mxu0 %v922_v32  ;;  %512 = vmatprep.subr.bf16.mxu1 %v924_v33 }
  0x4b   :  { %470 = vmatpush2.bf16.msra.mxu0 %v926_v34  ;;  %513 = vmatpush2.bf16.msra.mxu1 %v927_v35 }
  0x4c   :  { %471 = vmatprep.subr.bf16.mxu0 %v928_v36  ;;  %514 = vmatprep.subr.bf16.mxu1 %v930_v37 }
  0x4f   :  { %472 = vmatpush2.bf16.msra.mxu0 %v932_v38  ;;  %515 = vmatpush2.bf16.msra.mxu1 %v933_v39 }
  0x50   :  { %473 = vmatprep.subr.bf16.mxu0 %v934_v40  ;;  %516 = vmatprep.subr.bf16.mxu1 %v936_v41 }
  0x53   :  { %474 = vmatpush2.bf16.msra.mxu0 %v938_v42  ;;  %517 = vmatpush2.bf16.msra.mxu1 %v939_v43 }
  0x54   :  { %475 = vmatprep.subr.bf16.mxu0 %v940_v44  ;;  %518 = vmatprep.subr.bf16.mxu1 %v942_v45 }
  0x57   :  { %476 = vmatpush2.bf16.msra.mxu0 %v944_v46  ;;  %519 = vmatpush2.bf16.msra.mxu1 %v945_v47 }
  0x58   :  { %477 = vmatprep.subr.bf16.mxu0 %v946_v49  ;;  %520 = vmatprep.subr.bf16.mxu1 %v948_v50 }
  0x5b   :  { %478 = vmatpush2.bf16.msra.mxu0 %v950_v51  ;;  %521 = vmatpush2.bf16.msra.mxu1 %v951_v52 }
  0x5c   :  { %479 = vmatprep.subr.bf16.mxu0 %v952_v53  ;;  %522 = vmatprep.subr.bf16.mxu1 %v954_v54 }
  0x5f   :  { %480 = vmatpush2.bf16.msra.mxu0 %v956_v55  ;;  %523 = vmatpush2.bf16.msra.mxu1 %v957_v56 }
  0x60   :  { %481 = vmatprep.subr.bf16.mxu0 %v958_v57  ;;  %524 = vmatprep.subr.bf16.mxu1 %v960_v58 }
  0x63   :  { %482 = vmatpush2.bf16.msra.mxu0 %v962_v59  ;;  %525 = vmatpush2.bf16.msra.mxu1 %v963_v60 }
  0x64   :  { %483 = vmatprep.subr.bf16.mxu0 %v964_v61  ;;  %526 = vmatprep.subr.bf16.mxu1 %v966_v62 }
  0x67   :  { %484 = vmatpush2.bf16.msra.mxu0 %v968_v63  ;;  %527 = vmatpush2.bf16.msra.mxu1 %v969_v0 }
  0x68   :  { %842 = vmatprep.subr.bf16.mxu0 %v973_v1 }
  0x6a   :  { %486 = vmatmul.mubr.bf16.vlgmr.msra.gmra.mxu0 %v970_v2  ;;  %529 = vmatmul.mubr.bf16.vlgmr.msra.gmra.mxu1 %v970_v2 }
  0x6b   :  { %843 = vmatpush3.bf16.msra.mxu0 %v974_v3 }
  0x6c   :  { %844 = vmatprep.subr.bf16.mxu0 %v975_v4 }
  0x6f   :  { %845 = vmatpush3.bf16.msra.mxu0 %v976_v5 }
  0x70   :  { %846 = vmatprep.subr.bf16.mxu0 %v977_v6 }
  0x73   :  { %847 = vmatpush3.bf16.msra.mxu0 %v978_v7 }
  0x74   :  { %848 = vmatprep.subr.bf16.mxu0 %v979_v8 }
  0x77   :  { %849 = vmatpush3.bf16.msra.mxu0 %v980_v9 }
  0x78   :  { %850 = vmatprep.subr.bf16.mxu0 %v981_v10 }
  0x7b   :  { %851 = vmatpush3.bf16.msra.mxu0 %v982_v11 }
  0x7c   :  { %852 = vmatprep.subr.bf16.mxu0 %v983_v12 }
  0x7f   :  { %853 = vmatpush3.bf16.msra.mxu0 %v984_v13 }
  0x80   :  { %854 = vmatprep.subr.bf16.mxu0 %v985_v14 }
  0x83   :  { %855 = vmatpush3.bf16.msra.mxu0 %v986_v15 }
  0x84   :  { %856 = vmatprep.subr.bf16.mxu0 %v987_v16 }
  0x87   :  { %857 = vmatpush3.bf16.msra.mxu0 %v988_v17 }
 0x12a   :  { %v487_v18 = vpop.f32.mrf.mxu0  ;;  %v530_v19 = vpop.f32.mrf.mxu1 }
 0x12b   :  { %v539_v28 = vmul.f32 %v487_v18, %v487_v18  ;;  %v543_v29 = vmul.f32 %v530_v19, %v530_v19 }
 0x12c   :  { %v489_v20 = vpop.f32.mrf.mxu0  ;;  %v532_v21 = vpop.f32.mrf.mxu1 }
 0x12d   :  { %v540_v24 = vmul.f32 %v489_v20, %v489_v20  ;;  %v544_v25 = vmul.f32 %v532_v21, %v532_v21  ;;  %v547_v37 = vadd.f32 %v543_v29, %v539_v28 }
 0x12e   :  { %v491_v22 = vpop.f32.mrf.mxu0  ;;  %v534_v23 = vpop.f32.mrf.mxu1 }
 0x12f   :  { %v541_v26 = vmul.f32 %v491_v22, %v491_v22  ;;  %v545_v27 = vmul.f32 %v534_v23, %v534_v23  ;;  %v548_v35 = vadd.f32 %v544_v25, %v540_v24 }
 0x130   :  { %v493_v30 = vpop.f32.mrf.mxu0  ;;  %v536_v31 = vpop.f32.mrf.mxu1 }
 0x131   :  { %v542_v32 = vmul.f32 %v493_v30, %v493_v30  ;;  %v546_v33 = vmul.f32 %v536_v31, %v536_v31  ;;  %v549_v34 = vadd.f32 %v545_v27, %v541_v26 }
 0x133   :  { %v550_v36 = vadd.f32 %v546_v33, %v542_v32  ;;  %v551_v39 = vpack.c.bf16 %v549_v34, %v547_v37 }
 0x135   :  { %v552_v38 = vpack.c.bf16 %v550_v36, %v548_v35 }
 0x137   :  { %713 = vmatprep.mubr.bf16.mxu0 %v552_v38 }
 0x138   :  { %714 = vmatmul.mubr.bf16.vlgmr.msra.gmra.mxu0 %v551_v39 }
 0x1f8   :  { %v858_v40 = vpop.f32.mrf.mxu0 }
 0x1fa   :  { %v859_v41 = vpop.f32.mrf.mxu0 }
 0x1fb   :  { %v860_v42 = vadd.f32 %v859_v41, %v858_v40 }
 0x1fc   :  { %v861_v43 = vpop.f32.mrf.mxu0 }
 0x1fd   :  { %v722_v44 = vadd.f32 1.0, %v860_v42  ;;  %v725_v48 = vmul.f32 -0.5, %v860_v42  ;;  %v728_v51 = vand.u32 2147483647, %v860_v42 }
 0x1fe   :  { %v862_v45 = vpop.f32.mrf.mxu0 }
 0x1ff   :  { %989 = vlog2.f32 %v722_v44  ;;  %v863_v46 = vadd.f32 %v862_v45, %v861_v43  ;;  %v726_v49 = vadd.f32 1.0, %v725_v48  ;;  %vm729_vm0 = vcmp.lt.f32.partialorder %v728_v51, 0.0004427343 }
 0x201   :  { %v731_v47 = vadd.f32 1.0, %v863_v46  ;;  %v734_v50 = vmul.f32 -0.5, %v863_v46  ;;  %v727_v53 = vmul.f32 %v860_v42, %v726_v49  ;;  %v737_v56 = vand.u32 2147483647, %v863_v46 }
 0x203   :  { %991 = vlog2.f32 %v731_v47  ;;  %v735_v54 = vadd.f32 1.0, %v734_v50  ;;  %vm738_vm1 = vcmp.lt.f32.partialorder %v737_v56, 0.0004427343 }
 0x205   :  { %v736_v59 = vmul.f32 %v863_v46, %v735_v54 }
 0x20c   :  { %v990_v52 = vpop.eup %989 }
 0x20d   :  { %v724_v55 = vmul.f32 0.6931472, %v990_v52 }
 0x20f   :  { %v730_v57 = vsel %vm729_vm0, %v727_v53, %v724_v55 }
 0x210   :  { %v992_v58 = vpop.eup %991  ;;  %740 = vst [vmem:[#allocation8] sm:$0xff] %v730_v57 }
 0x211   :  { %v733_v60 = vmul.f32 0.6931472, %v992_v58 }
 0x213   :  { %v739_v61 = vsel %vm738_vm1, %v736_v59, %v733_v60 }
 0x214   :  { %741 = vst [vmem:[#allocation8 + $0x8] sm:$0xff] %v739_v61 }
 0x215   :  { %1064 = shalt.err (!%p1061_p5)
}
 0x216   :  { %753 = dma.vmem_to_hbm [thread:$0]  %s748_s2, 256, %s1130_s3, [#allocation4], %s1083_s22, %s1083_s22, %s1084_s23  }
 0x217   :  { %1077 = dma.done.wait [#allocation4], 256  }
 0x218   :  { %1078 = vsyncadd [#allocation4], 4294967040 }
 0x219   :  { %757 = vsyncpa [#allocation3], 1 }
 0x21a   :  { %758 = vsyncpa [#allocation6], 1 }
 0x21b   :  { %759 = vsyncpa [#allocation4], 1 }

</bundles_post_ra>
